<compile_context>
chip_gen: v6e
topology: v6e:2x2x1
jax: 0.10.0
libtpu: 0.0.40
codegen_flags: <defaults>
</compile_context>

<pallas_src>
import math

import jax
import jax.numpy as jnp
from jax.experimental import pallas as pl
from jax.experimental.pallas import tpu as pltpu


def _round_up(v, m):
    return ((v + m - 1) // m) * m


def _pick_tile(dim, target, quantum, min_tile):
    """Pick a tile for one (lane-ish) dimension.

    Returns (tile, padded_dim). Prefers, in order:
      1. the full dimension (no padding, no tiling) when dim <= target,
      2. a multiple of `quantum` <= target that divides the quantum-padded dim
         (so at most cheap quantum-padding is needed),
      3. padding dim up to a multiple of `target`.
    """
    if dim <= target:
        return dim, dim
    padded = _round_up(dim, quantum)
    t = (target // quantum) * quantum
    lo = max(quantum, min_tile)
    while t >= lo:
        if padded % t == 0:
            return t, padded
        t -= quantum
    return (target // quantum) * quantum, _round_up(dim, (target // quantum) * quantum)


def _plan(M, N, K, in_b, out_b, budget):
    """Choose (tm, tn, tk) and padded dims so the working set fits `budget`."""
    tm_t, tn_t = 512, 1024
    tk_t = max(512, K)  # prefer a single K step (no f32 accumulator round trip)
    while True:
        tm = M if M <= tm_t else tm_t
        Mp = M if tm == M else _round_up(M, tm)
        tn, Np = _pick_tile(N, tn_t, 128, 256)
        tk, Kp = _pick_tile(K, tk_t, 128, 256)
        k_steps = Kp // tk
        wset = (
            2 * (tm * tk + tk * tn) * in_b        # double-buffered x / W tiles
            + 2 * tn * 4                          # bias tile (f32)
            + (tm * tn * 4 if k_steps > 1 else 0)  # f32 accumulator scratch
            + 2 * tm * tn * out_b                 # double-buffered output tile
        )
        if wset <= budget:
            return tm, tn, tk, Mp, Np, Kp, wset
        # Shrink the least-valuable tile first (tk only affects loop overhead,
        # tm/tn set the HBM re-streaming factor).
        if tk_t > 512:
            tk_t = max(512, _round_up(tk_t // 2, 128))
        elif tn_t > 256:
            tn_t //= 2
        elif tm_t > 128:
            tm_t //= 2
        elif tk_t > 128:
            tk_t //= 2
        else:
            return tm, tn, tk, Mp, Np, Kp, wset


def _linear_kernel_fullk(x_ref, w_ref, b_ref, o_ref):
    # Single K step: dot straight to the output tile, no accumulator scratch.
    o_ref[...] = (
        jnp.dot(x_ref[...], w_ref[...], preferred_element_type=jnp.float32)
        + b_ref[...]
    ).astype(o_ref.dtype)


def _linear_kernel_acc(x_ref, w_ref, b_ref, o_ref, acc_ref):
    # x_ref  : (tm, tk)  input-row tile
    # w_ref  : (tk, tn)  weight tile in native [K, N] orientation
    # b_ref  : (1, tn)   bias tile (f32)
    # acc_ref: (tm, tn)  f32 accumulator, persists across the K axis
    k = pl.program_id(2)

    @pl.when(k == 0)
    def _():
        acc_ref[...] = jnp.zeros_like(acc_ref)

    acc_ref[...] += jnp.dot(
        x_ref[...], w_ref[...], preferred_element_type=jnp.float32
    )

    @pl.when(k == pl.num_programs(2) - 1)
    def _():
        o_ref[...] = (acc_ref[...] + b_ref[...]).astype(o_ref.dtype)


def prepare_for_mha(x, weight, bias, heads, d_k, *, compute_dtype=None):
    """
    x      : [seq_len, batch, d_model]  or  [batch, d_model]
    weight : [heads*d_k, d_model]   (nn.Linear weight layout, NOT transposed)
    bias   : [heads*d_k] or None    (any float dtype; used in f32)
    compute_dtype: optional matmul-operand dtype (e.g. jnp.bfloat16) — a
                   precision tradeoff; accumulation stays f32.
    returns: [*x.shape[:-1], heads, d_k]
    """
    head_shape = x.shape[:-1]
    d_model = x.shape[-1]
    N = heads * d_k
    assert weight.shape == (N, d_model)

    out_dtype = x.dtype

    x2d = x.reshape(-1, d_model)
    M = x2d.shape[0]

    # Weight in native [K, N] orientation: one wrapper-side transpose (fused
    # with any padding copy below); the kernel streams tiles straight into the
    # MXU with no per-step relayout.
    w_kn = weight.T
    if compute_dtype is not None:
        x2d = x2d.astype(compute_dtype)
        w_kn = w_kn.astype(compute_dtype)

    in_b = jnp.dtype(x2d.dtype).itemsize
    out_b = jnp.dtype(out_dtype).itemsize

    # Generation-aware VMEM budget (v5e/v6e: 128 MiB physical, v7x: 64 MiB).
    try:
        vmem_cap = int(pltpu.get_tpu_info().vmem_capacity_bytes)
    except Exception:
        vmem_cap = 128 << 20
    budget = min(int(0.70 * vmem_cap), 96 << 20)

    tm, tn, tk, Mp, Np, Kp, wset = _plan(M, N, d_model, in_b, out_b, budget)

    # Decode-style shapes: if the whole (i, j) grid collapses to one block,
    # split N so the "parallel" j axis can be sharded across two TensorCores
    # (v7x). Harmless (one extra grid step) on single-TC parts.
    if Mp // tm == 1 and Np // tn == 1 and tn % 256 == 0:
        tn //= 2

    k_steps = Kp // tk

    # Padding (usually a no-op for N/K because the tiles are exact divisors):
    # zero K-padding is exact; padded M rows / N cols are sliced off afterwards.
    if Mp != M or Kp != d_model:
        x_p = jnp.pad(x2d, ((0, Mp - M), (0, Kp - d_model)))
    else:
        x_p = x2d
    if Kp != d_model or Np != N:
        w_p = jnp.pad(w_kn, ((0, Kp - d_model), (0, Np - N)))
    else:
        w_p = w_kn
    if bias is None:
        b_p = jnp.zeros((1, Np), dtype=jnp.float32)
    else:
        b_row = bias.astype(jnp.float32).reshape(1, N)
        b_p = jnp.pad(b_row, ((0, 0), (0, Np - N))) if Np != N else b_row

    vmem_limit = max(32 << 20, min(budget, int(2 * wset) + (8 << 20)))

    cost = pl.CostEstimate(
        flops=2 * Mp * Np * Kp,
        transcendentals=0,
        bytes_accessed=(
            x_p.size * in_b + w_p.size * in_b + b_p.size * 4 + Mp * Np * out_b
        ),
    )

    if k_steps == 1:
        grid = (Mp // tm, Np // tn)
        grid_spec = pltpu.PrefetchScalarGridSpec(
            num_scalar_prefetch=0,
            grid=grid,
            in_specs=[
                pl.BlockSpec((tm, Kp), lambda i, j: (i, 0)),   # x rows, full K
                pl.BlockSpec((Kp, tn), lambda i, j: (0, j)),   # weight [K, N]
                pl.BlockSpec((1, tn), lambda i, j: (0, j)),    # bias (f32)
            ],
            out_specs=pl.BlockSpec((tm, tn), lambda i, j: (i, j)),
            scratch_shapes=[],
        )
        kernel = _linear_kernel_fullk
        dims = ("parallel", "parallel")
    else:
        grid = (Mp // tm, Np // tn, k_steps)
        grid_spec = pltpu.PrefetchScalarGridSpec(
            num_scalar_prefetch=0,
            grid=grid,
            in_specs=[
                pl.BlockSpec((tm, tk), lambda i, j, k: (i, k)),   # x rows
                pl.BlockSpec((tk, tn), lambda i, j, k: (k, j)),   # weight [K, N]
                pl.BlockSpec((1, tn), lambda i, j, k: (0, j)),    # bias (f32)
            ],
            out_specs=pl.BlockSpec((tm, tn), lambda i, j, k: (i, j)),
            scratch_shapes=[pltpu.VMEM((tm, tn), jnp.float32)],
        )
        kernel = _linear_kernel_acc
        dims = ("parallel", "parallel", "arbitrary")

    out2d = pl.pallas_call(
        kernel,
        out_shape=jax.ShapeDtypeStruct((Mp, Np), out_dtype),
        grid_spec=grid_spec,
        compiler_params=pltpu.CompilerParams(
            dimension_semantics=dims,
            vmem_limit_bytes=vmem_limit,
        ),
        cost_estimate=cost,
    )(x_p, w_p, b_p)

    if Mp != M or Np != N:
        out2d = out2d[:M, :N]
    return out2d.reshape(*head_shape, heads, d_k)


if __name__ == "__main__":
    # Small shapes consistent with the module's forward.
    seq_len, batch, d_model = 8, 2, 32
    heads, d_k = 4, 16
    use_bias = True

    key = jax.random.PRNGKey(0)
    kx, kw, kb = jax.random.split(key, 3)

    x = jax.random.normal(kx, (seq_len, batch, d_model), dtype=jnp.float32)

    # Deterministic nn.Linear-style init (uniform in +/- 1/sqrt(fan_in)).
    bound = 1.0 / math.sqrt(d_model)
    weight = jax.random.uniform(
        kw, (heads * d_k, d_model), minval=-bound, maxval=bound, dtype=jnp.float32
    )
    bias = (
        jax.random.uniform(
            kb, (heads * d_k,), minval=-bound, maxval=bound, dtype=jnp.float32
        )
        if use_bias
        else None
    )

    out = prepare_for_mha(x, weight, bias, heads, d_k)
    out = jax.block_until_ready(out)

    # Reference check in plain JAX (same math as the PyTorch module).
    ref = (
        x.reshape(-1, d_model) @ weight.T + (bias if bias is not None else 0.0)
    ).reshape(seq_len, batch, heads, d_k)
    assert out.shape == (seq_len, batch, heads, d_k)
    assert jnp.allclose(out, ref, atol=1e-5, rtol=1e-5)

    print("KERNEL_OK")
</pallas_src>

<mosaic_0001>
module attributes {stable_mosaic.version = 11 : i64} {
  func.func @_linear_kernel_fullk(%arg0: i32, %arg1: i32, %arg2: memref<16x32xf32, #tpu.memory_space<vmem>>, %arg3: memref<32x64xf32, #tpu.memory_space<vmem>>, %arg4: memref<1x64xf32, #tpu.memory_space<vmem>>, %arg5: memref<16x64xf32, #tpu.memory_space<vmem>>) attributes {dimension_semantics = [#tpu.dimension_semantics<parallel>, #tpu.dimension_semantics<parallel>], iteration_bounds = array<i64: 1, 1>, scalar_prefetch = 0 : i64, scratch_operands = 0 : i64, tpu.core_type = #tpu.core_type<tc>, window_params = [{transform_indices = @transform_0, window_bounds = array<i64: 16, 32>}, {transform_indices = @transform_1, window_bounds = array<i64: 32, 64>}, {transform_indices = @transform_2, window_bounds = array<i64: 1, 64>}, {transform_indices = @transform_3, window_bounds = array<i64: 16, 64>}]} {
    %c0 = arith.constant 0 : index
    %c0_0 = arith.constant 0 : index
    %0 = vector.load %arg2[%c0, %c0_0] : memref<16x32xf32, #tpu.memory_space<vmem>>, vector<16x32xf32>
    %c0_1 = arith.constant 0 : index
    %c0_2 = arith.constant 0 : index
    %1 = vector.load %arg3[%c0_1, %c0_2] : memref<32x64xf32, #tpu.memory_space<vmem>>, vector<32x64xf32>
    %cst = arith.constant dense<0.000000e+00> : vector<16x64xf32>
    %2 = tpu.matmul %0, %1, %cst {dimension_numbers = #tpu.dot_dimension_numbers<[1], [0], [0], [1], [0, 0, 1, 1], [], []>} : vector<16x32xf32>, vector<32x64xf32>, vector<16x64xf32> -> vector<16x64xf32>
    %c0_3 = arith.constant 0 : index
    %c0_4 = arith.constant 0 : index
    %3 = vector.load %arg4[%c0_3, %c0_4] : memref<1x64xf32, #tpu.memory_space<vmem>>, vector<1x64xf32>
    %4 = vector.broadcast %3 : vector<1x64xf32> to vector<16x64xf32>
    %5 = arith.addf %2, %4 : vector<16x64xf32>
    %c0_5 = arith.constant 0 : index
    %c0_6 = arith.constant 0 : index
    %6 = vector.load %arg5[%c0_5, %c0_6] : memref<16x64xf32, #tpu.memory_space<vmem>>, vector<16x64xf32>
    tpu.vector_store %arg5[%c0_5, %c0_6], %5 {strides = array<i32>} : memref<16x64xf32, #tpu.memory_space<vmem>>, vector<16x64xf32>,
    return
  }
  func.func @transform_0(%arg0: i32, %arg1: i32) -> (i32, i32) {
    %c0_i32 = arith.constant 0 : i32
    %c0_i32_0 = arith.constant 0 : i32
    return %arg0, %c0_i32 : i32, i32
  }
  func.func @transform_1(%arg0: i32, %arg1: i32) -> (i32, i32) {
    %c0_i32 = arith.constant 0 : i32
    %c0_i32_0 = arith.constant 0 : i32
    return %c0_i32, %arg1 : i32, i32
  }
  func.func @transform_2(%arg0: i32, %arg1: i32) -> (i32, i32) {
    %c0_i32 = arith.constant 0 : i32
    %c0_i32_0 = arith.constant 0 : i32
    return %c0_i32, %arg1 : i32, i32
  }
  func.func @transform_3(%arg0: i32, %arg1: i32) -> (i32, i32) {
    %c0_i32 = arith.constant 0 : i32
    return %arg0, %arg1 : i32, i32
  }
}

</mosaic_0001>

<bundles_post_ra>
// kernel: tpu_custom_call.1
= control target key start
LH: loop header
LB: loop body
LE: loop exit
PB: predicated region body
PF: predicated region fallthrough
CT: control target
= control target key end

     0   :  { %8 = vsyncpa [#allocation3], 0  ;;  %s298_s0 = inlined_call_operand.hbm [shape: f32[16,32], index: 0, kind: input, shape index: {}]   ;;  %s299_s1 = inlined_call_operand.hbm [shape: f32[32,64], index: 1, kind: input, shape index: {}]   ;;  %s300_s2 = inlined_call_operand.vmem [shape: f32[1,64], index: 2, kind: input, shape index: {}]   ;;  %s301_s3 = inlined_call_operand.hbm [shape: f32[16,64], index: 3, kind: output, shape index: {}]  }
   0x1   :  { %9 = vsyncpa [#allocation6], 0 }
   0x2   :  { %10 = vsyncpa [#allocation4], 0  ;;  %s250_s12 = smov [#allocation2]  }
   0x3   :  { %s16_s13 = sshll.u32 %s250_s12, 4  ;;  %s17_s13 = int_to_ptr.vmem [resolvable:$true] %s16_s13 }
   0x4   :  { %s192_s14 = scalar_lea.vmem %s17_s13, 256  ;;  %p197_p1 = scmp.lt.s32.totalorder %s17_s13, %s17_s13 }
   0x5   :  { %p193_p0 = scmp.ne.s32.totalorder %s17_s13, %s192_s14  ;;  %p198_p2 = scmp.lt.s32.totalorder %s192_s14, %s192_s14 }
   0x7   :  { %p199_p3 = por %p198_p2, %p197_p1 }
   0x9   :  { %p200_p4 = pnand %p199_p3, %p193_p0 }
   0xb   :  { %203 = shalt.err (!%p200_p4)
}
   0xc   :  { %s251_s15 = smov 128   ;;  %s252_s16 = smov 8  }
   0xd   :  { %22 = dma.hbm_to_vmem [thread:$0]  %s298_s0, 256, %s17_s13, [#allocation3], %s251_s15, %s251_s15, %s252_s16  }
   0xe   :  { %s253_s19 = smov [#allocation5]  }
   0xf   :  { %s28_s20 = sshll.u32 %s253_s19, 4  ;;  %s29_s20 = int_to_ptr.vmem [resolvable:$true] %s28_s20 }
  0x10   :  { %s212_s21 = scalar_lea.vmem %s29_s20, 512  ;;  %p217_p6 = scmp.lt.s32.totalorder %s29_s20, %s29_s20 }
  0x11   :  { %p213_p5 = scmp.ne.s32.totalorder %s29_s20, %s212_s21  ;;  %p218_p7 = scmp.lt.s32.totalorder %s212_s21, %s212_s21 }
  0x13   :  { %p219_p8 = por %p218_p7, %p217_p6 }
  0x15   :  { %p220_p9 = pnand %p219_p8, %p213_p5 }
  0x17   :  { %223 = shalt.err (!%p220_p9)
}
  0x18   :  { %34 = dma.hbm_to_vmem [thread:$0]  %s299_s1, 512, %s29_s20, [#allocation6], %s251_s15, %s251_s15, %s252_s16  }
  0x19   :  { %244 = dma.done.wait [#allocation3], 256  }
  0x1a   :  { %245 = vsyncadd [#allocation3], 4294967040 }
  0x1b   :  { %246 = dma.done.wait [#allocation6], 512  }
  0x1c   :  { %247 = vsyncadd [#allocation6], 4294966784  ;;  %vm56_vm0 = vcmask 261120   ;;  %v48_v0 = vld [vmem:[#allocation5 + $0x18] sm:$0xff]  ;;  %v47_v1 = vld [vmem:[#allocation5 + $0x10] sm:$0xff]  ;;  %vm138_vm1 = vcmask 523264  }
  0x1d   :  { %168 = vmatprep.subr.mxu0 %v48_v0  ;;  %v43_v2 = vld [vmem:[#allocation2] sm:$0xff]  ;;  %v46_v3 = vld [vmem:[#allocation5 + $0x8] sm:$0xff]  ;;  %v45_v4 = vld [vmem:[#allocation5] sm:$0xff]  ;;  %s254_s24 = smov [#allocation7]  }
  0x1e   :  { %169 = vmatpush3.msra.mxu0 %v48_v0  ;;  %176 = vmatprep.mubr.msk.f32.mxu0 %vm56_vm0, %v43_v2  ;;  %v44_v5 = vld [vmem:[#allocation2 + $0x8] sm:$0xff]  ;;  %v159_v6 = vld [vmem:[%s300_s2] ss:$0 sm:$0xff]  ;;  %s146_s25 = sshll.u32 %s254_s24, 4  ;;  %s147_s25 = int_to_ptr.vmem [resolvable:$true] %s146_s25 }
  0x1f   :  { %170 = vmatprep.subr.mxu0 %v47_v1  ;;  %s224_s26 = scalar_lea.vmem %s147_s25, 256  ;;  %p229_p11 = scmp.lt.s32.totalorder %s147_s25, %s147_s25 }
  0x20   :  { %171 = vmatpush3.msra.mxu0 %v47_v1  ;;  %p225_p10 = scmp.ne.s32.totalorder %s147_s25, %s224_s26  ;;  %p230_p12 = scmp.lt.s32.totalorder %s224_s26, %s224_s26 }
  0x21   :  { %172 = vmatprep.subr.mxu0 %v46_v3 }
  0x22   :  { %173 = vmatpush3.msra.mxu0 %v46_v3  ;;  %p231_p13 = por %p230_p12, %p229_p11 }
  0x23   :  { %174 = vmatprep.subr.mxu0 %v45_v4 }
  0x24   :  { %175 = vmatpush3.msra.mxu0 %v45_v4  ;;  %p232_p0 = pnand %p231_p13, %p225_p10 }
  0x25   :  { %177 = vmatmul.mubr.msk.f32.vlgmr.msra.gmra.mxu0 %vm56_vm0, %v44_v5 }
  0xe5   :  { %v178_v7 = vpop.f32.mrf.mxu0 }
  0xe6   :  { %v135_v8 = vadd.f32 %v178_v7, %v159_v6 }
  0xe7   :  { %v129_v9 = vpop.f32.mrf.mxu0 }
  0xe8   :  { %v130_v10 = vadd.f32 %v159_v6, %v129_v9  ;;  %140 = vst.msk [vmem:[#allocation7 + $0x8] sm:$0xff] %vm138_vm1, %v135_v8 }
  0xea   :  { %139 = vst.msk [vmem:[#allocation7] sm:$0xff] %vm138_vm1, %v130_v10 }
  0xeb   :  { %235 = shalt.err (!%p232_p0)
}
  0xec   :  { %152 = dma.vmem_to_hbm [thread:$0]  %s147_s25, 256, %s301_s3, [#allocation4], %s251_s15, %s251_s15, %s252_s16  }
  0xed   :  { %248 = dma.done.wait [#allocation4], 256  }
  0xee   :  { %249 = vsyncadd [#allocation4], 4294967040 }
  0xef   :  { %156 = vsyncpa [#allocation3], 1 }
  0xf0   :  { %157 = vsyncpa [#allocation6], 1 }
  0xf1   :  { %158 = vsyncpa [#allocation4], 1 }

</bundles_post_ra>
